<compile_context>
chip_gen: v6e
topology: v6e:2x2x1
jax: 0.10.0
libtpu: 0.0.40
codegen_flags: <defaults>
</compile_context>

<pallas_src>
import jax
import jax.numpy as jnp
from jax.experimental import pallas as pl
from jax.experimental.pallas import tpu as pltpu


def _metapath_wsum_kernel(attn_ref, fea_ref, o_ref):
    """Weighted sum over metapaths for one row tile.

    attn_ref: SMEM (1, M)     softmax attention weights (f32 scalars)
    fea_ref : VMEM (M, tm, D) per-metapath feature tile
    o_ref   : VMEM (tm, D)    output tile
    """
    num_metapaths = fea_ref.shape[0]
    # Static unroll over the small metapath axis: SMEM scalar * VMEM tile,
    # accumulated in f32.
    acc = fea_ref[0].astype(jnp.float32) * attn_ref[0, 0]
    for m in range(1, num_metapaths):
        acc = acc + fea_ref[m].astype(jnp.float32) * attn_ref[0, m]
    o_ref[...] = acc.astype(o_ref.dtype)


def metapath_weighted_sum(fea, attn, *, tm=128):
    """fea: [M, N, D] stacked per-metapath features, attn: [M] softmax weights.

    Returns sum_m(attn[m] * fea[m]) with shape [N, D].
    """
    m_paths, n, d = fea.shape

    # Row tile: multiple of 8 sublanes (or full N); D is passed as the full
    # last dim so the (8,128) rule is satisfied via the full-dim exemption.
    tm = min(tm, n)
    if tm != n and tm % 8 != 0:
        tm = max(8, (tm // 8) * 8)

    grid = (pl.cdiv(n, tm),)
    attn2d = attn.reshape(1, m_paths).astype(jnp.float32)

    return pl.pallas_call(
        _metapath_wsum_kernel,
        out_shape=jax.ShapeDtypeStruct((n, d), fea.dtype),
        grid=grid,
        in_specs=[
            # Attention weights: tiny, untiled, scalar-indexed from SMEM.
            pl.BlockSpec(memory_space=pltpu.MemorySpace.SMEM),
            # Per-metapath feature tile: all M metapaths for a row tile.
            pl.BlockSpec((m_paths, tm, d), lambda i: (0, i, 0)),
        ],
        out_specs=pl.BlockSpec((tm, d), lambda i: (i, 0)),
        compiler_params=pltpu.CompilerParams(
            dimension_semantics=("parallel",),
        ),
    )(attn2d, fea)


def metapath_embedding(drug_fea_tensor, protein_fea_tensor, weight_attn):
    """Equivalent of Metapath_Embeding_fun.forward.

    drug_fea_tensor:    [M, Nd, D]
    protein_fea_tensor: [M, Np, D]
    weight_attn:        [M, 1, 1]
    """
    # Tiny M-element softmax is deliberately left to XLA (it is not part of the
    # O(M*N*D) main memory stream); the kernel consumes the normalized weights.
    attn = jax.nn.softmax(weight_attn.reshape(-1).astype(jnp.float32))
    drug_fea = metapath_weighted_sum(drug_fea_tensor, attn)
    protein_fea = metapath_weighted_sum(protein_fea_tensor, attn)
    return drug_fea, protein_fea


if __name__ == "__main__":
    # Small shapes consistent with the module: M metapaths, D feature dim,
    # Nd drugs / Np proteins. D = 128 keeps stores lane-dense.
    M, D = 4, 128
    N_DRUG, N_PROT = 256, 384

    key = jax.random.PRNGKey(0)
    k_attn, k_drug, k_prot = jax.random.split(key, 3)

    # nn.init.normal_(self.weight_attn) with shape [M, 1, 1]
    weight_attn = jax.random.normal(k_attn, (M, 1, 1), jnp.float32)

    drug_fea_tensor = jax.random.uniform(k_drug, (M, N_DRUG, D), jnp.float32)
    protein_fea_tensor = jax.random.uniform(k_prot, (M, N_PROT, D), jnp.float32)

    drug_fea, protein_fea = metapath_embedding(
        drug_fea_tensor, protein_fea_tensor, weight_attn
    )
    drug_fea = jax.block_until_ready(drug_fea)
    protein_fea = jax.block_until_ready(protein_fea)

    # Reference check in plain JAX (same math as the PyTorch forward).
    attn_ref = jax.nn.softmax(weight_attn, axis=0)            # [M, 1, 1]
    drug_ref = jnp.sum(drug_fea_tensor * attn_ref, axis=0)
    prot_ref = jnp.sum(protein_fea_tensor * attn_ref, axis=0)

    assert drug_fea.shape == (N_DRUG, D) and protein_fea.shape == (N_PROT, D)
    assert jnp.allclose(drug_fea, drug_ref, atol=1e-5, rtol=1e-5)
    assert jnp.allclose(protein_fea, prot_ref, atol=1e-5, rtol=1e-5)

    print("KERNEL_OK")
</pallas_src>

<mosaic_0001>
module attributes {stable_mosaic.version = 11 : i64} {
  func.func @_metapath_wsum_kernel(%arg0: i32, %arg1: memref<1x4xf32, #tpu.memory_space<smem>>, %arg2: memref<4x128x128xf32, #tpu.memory_space<vmem>>, %arg3: memref<128x128xf32, #tpu.memory_space<vmem>>) attributes {dimension_semantics = [#tpu.dimension_semantics<parallel>], iteration_bounds = array<i64: 2>, scalar_prefetch = 0 : i64, scratch_operands = 0 : i64, tpu.core_type = #tpu.core_type<tc>, window_params = [{transform_indices = @transform_0, window_bounds = array<i64: 1, 4>}, {transform_indices = @transform_1, window_bounds = array<i64: 4, 128, 128>}, {transform_indices = @transform_2, window_bounds = array<i64: 128, 128>}]} {
    %c0 = arith.constant 0 : index
    %c0_0 = arith.constant 0 : index
    %c0_1 = arith.constant 0 : index
    %0 = vector.load %arg2[%c0, %c0_0, %c0_1] : memref<4x128x128xf32, #tpu.memory_space<vmem>>, vector<1x128x128xf32>
    %1 = vector.shape_cast %0 : vector<1x128x128xf32> to vector<128x128xf32>
    %c0_2 = arith.constant 0 : index
    %c0_3 = arith.constant 0 : index
    %2 = memref.load %arg1[%c0_2, %c0_3] : memref<1x4xf32, #tpu.memory_space<smem>>
    %3 = vector.broadcast %2 : f32 to vector<128x128xf32>
    %4 = arith.mulf %1, %3 : vector<128x128xf32>
    %c1 = arith.constant 1 : index
    %c0_4 = arith.constant 0 : index
    %c0_5 = arith.constant 0 : index
    %5 = vector.load %arg2[%c1, %c0_4, %c0_5] : memref<4x128x128xf32, #tpu.memory_space<vmem>>, vector<1x128x128xf32>
    %6 = vector.shape_cast %5 : vector<1x128x128xf32> to vector<128x128xf32>
    %c0_6 = arith.constant 0 : index
    %c1_7 = arith.constant 1 : index
    %7 = memref.load %arg1[%c0_6, %c1_7] : memref<1x4xf32, #tpu.memory_space<smem>>
    %8 = vector.broadcast %7 : f32 to vector<128x128xf32>
    %9 = arith.mulf %6, %8 : vector<128x128xf32>
    %10 = arith.addf %4, %9 : vector<128x128xf32>
    %c2 = arith.constant 2 : index
    %c0_8 = arith.constant 0 : index
    %c0_9 = arith.constant 0 : index
    %11 = vector.load %arg2[%c2, %c0_8, %c0_9] : memref<4x128x128xf32, #tpu.memory_space<vmem>>, vector<1x128x128xf32>
    %12 = vector.shape_cast %11 : vector<1x128x128xf32> to vector<128x128xf32>
    %c0_10 = arith.constant 0 : index
    %c2_11 = arith.constant 2 : index
    %13 = memref.load %arg1[%c0_10, %c2_11] : memref<1x4xf32, #tpu.memory_space<smem>>
    %14 = vector.broadcast %13 : f32 to vector<128x128xf32>
    %15 = arith.mulf %12, %14 : vector<128x128xf32>
    %16 = arith.addf %10, %15 : vector<128x128xf32>
    %c3 = arith.constant 3 : index
    %c0_12 = arith.constant 0 : index
    %c0_13 = arith.constant 0 : index
    %17 = vector.load %arg2[%c3, %c0_12, %c0_13] : memref<4x128x128xf32, #tpu.memory_space<vmem>>, vector<1x128x128xf32>
    %18 = vector.shape_cast %17 : vector<1x128x128xf32> to vector<128x128xf32>
    %c0_14 = arith.constant 0 : index
    %c3_15 = arith.constant 3 : index
    %19 = memref.load %arg1[%c0_14, %c3_15] : memref<1x4xf32, #tpu.memory_space<smem>>
    %20 = vector.broadcast %19 : f32 to vector<128x128xf32>
    %21 = arith.mulf %18, %20 : vector<128x128xf32>
    %22 = arith.addf %16, %21 : vector<128x128xf32>
    %c0_16 = arith.constant 0 : index
    %c0_17 = arith.constant 0 : index
    %23 = vector.load %arg3[%c0_16, %c0_17] : memref<128x128xf32, #tpu.memory_space<vmem>>, vector<128x128xf32>
    tpu.vector_store %arg3[%c0_16, %c0_17], %22 {strides = array<i32>} : memref<128x128xf32, #tpu.memory_space<vmem>>, vector<128x128xf32>,
    return
  }
  func.func @transform_0(%arg0: i32) -> (i32, i32) {
    %c0_i32 = arith.constant 0 : i32
    %c0_i32_0 = arith.constant 0 : i32
    %c0_i32_1 = arith.constant 0 : i32
    return %c0_i32, %c0_i32_0 : i32, i32
  }
  func.func @transform_1(%arg0: i32) -> (i32, i32, i32) {
    %c0_i32 = arith.constant 0 : i32
    %c0_i32_0 = arith.constant 0 : i32
    %c0_i32_1 = arith.constant 0 : i32
    return %c0_i32, %arg0, %c0_i32_0 : i32, i32, i32
  }
  func.func @transform_2(%arg0: i32) -> (i32, i32) {
    %c0_i32 = arith.constant 0 : i32
    %c0_i32_0 = arith.constant 0 : i32
    return %arg0, %c0_i32 : i32, i32
  }
}

</mosaic_0001>

<bundles_post_ra>
// kernel: tpu_custom_call.1
= control target key start
LH: loop header
LB: loop body
LE: loop exit
PB: predicated region body
PF: predicated region fallthrough
CT: control target
= control target key end

     0   :  { %7 = vsyncpa [#allocation5], 0  ;;  %s1066_s0 = inlined_call_operand.hbm [shape: f32[1,4], index: 0, kind: input, shape index: {}]   ;;  %s1067_s1 = inlined_call_operand.hbm [shape: f32[4,256,128], index: 1, kind: input, shape index: {}]   ;;  %s1068_s2 = inlined_call_operand.hbm [shape: f32[256,128], index: 2, kind: output, shape index: {}]  }
   0x1   :  { %8 = vsyncpa [#allocation3], 0 }
   0x2   :  { %10 = vsyncpa [#allocation3 + $0x1], 0 }
   0x3   :  { %11 = vsyncpa [#allocation4], 0 }
   0x4   :  { %13 = vsyncpa [#allocation4 + $0x1], 0  ;;  %s747_s9 = smov 0   ;;  %s749_s10 = smov 0  }
   0x5   :  { %s751_s11 = smov 0   ;;  %s753_s12 = smov 0  }
   0x6 LB: > { %s768_s13 = sadd.s32 4294967295, %s720_s12   ;;  %s503_s14 = sadd.s32 4294967294, %s720_s12   ;;  %s720_s12 = sphi %s753_s12, %s1077_s12   ;;  %s716_s11 = sphi %s751_s11, %s1076_s11   ;;  %s712_s10 = sphi %s749_s10, %s1075_s10   ;;  %s708_s9 = sphi %s747_s9, %s1074_s9  }
   0x7   : > { %s772_s15 = sadd.s32 1, %s720_s12   ;;  %s47_s16 = sadd.s32 1, %s716_s11 }
   0x8   : > { %s44_s17 = ssub.s32 %s720_s12, %s772_s15  ;;  %p54_p0 = scmp.ne.s32.totalorder %s716_s11, %s712_s10 }
   0x9   : > { %p45_p1 = scmp.eq.s32.totalorder %s44_s17, 0  ;;  %p55_p2 = scmp.eq.s32.totalorder %s720_s12, 0 }
   0xa   : > { %p60_p3 = scmp.ne.s32.totalorder %s712_s10, %s708_s9  ;;  %p61_p4 = scmp.eq.s32.totalorder %s768_s13, 0 }
   0xb   : > { %s784_s18 = scalar_select %p45_p1, %s716_s11, %s47_s16  }
   0xc   : > { %p786_p5 = por %p55_p2, %p54_p0  ;;  %p792_p6 = por %p61_p4, %p60_p3 }
   0xd   : > { %p84_p7 = scmp.eq.s32.totalorder %s768_s13, 1  ;;  %p90_p8 = scmp.eq.s32.totalorder %s503_s14, 1 }
   0xe   : > { %p504_p9 = scmp.ge.s32.totalorder %s720_s12, 1  ;;  %p97_p10 = scmp.lt.s32.totalorder %s720_s12, 3 }
   0xf   : > { %p799_p11 = por %p84_p7, %p54_p0  ;;  %p803_p12 = por %p90_p8, %p60_p3 }
  0x10   : > { %p807_p13 = pnand %p504_p9, %p97_p10  ;;  %s722_s24 = smov [#allocation2]  }
  0x11   : > { %p506_p0 = scmp.ge.s32.totalorder %s720_s12, 2 }
  0x12   : > { %p589_p1 = pneg %p807_p13 }
  0x13   : > { %115 = sbr.rel (%p506_p0) target bundleno = 37 (0x25), region = 20 }
  0x14   : > { %p590_p2 = pnand %p589_p1, %p61_p4 }
  0x16   : > { %592 = dma.hbm_to_smem (!%p590_p2), %s1066_s0, 16, %s722_s24, [#allocation5]  }
  0x18   : > { %s119_s27 = sand.u32 1, %s716_s11   ;;  %s572_s28 = sshll.u32 %s720_s12, 11 }
  0x19   : > { %s507_s29 = sshll.u32 %s119_s27, 9  ;;  %s129_s4 = scalar_lea.hbm %s1067_s1, %s572_s28 }
  0x1a   : > { %s576_s5 = scalar_select %p786_p5, [#allocation0], [#allocation10] }
  0x1b   : > { %s123_s6 = scalar_lea.vmem [#allocation6], %s507_s29  ;;  %s723_s14 = smov 4096  }
  0x1c   : > { %s142_s7 = sshll.u32 %s123_s6, 4  ;;  %s134_s8 = sld [smem:[%s576_s5]]   ;;  %s143_s7 = int_to_ptr.vmem [resolvable:$true] %s142_s7 }
  0x1d   : > { %577 = sst [smem:[#allocation9]] (%p786_p5), %s723_s14  ;;  %s724_s16 = smov 2048  }
  0x1e   : > { %578 = sst [smem:[#allocation9 + $0x1]] (%p786_p5), %s724_s16  ;;  %s725_s17 = smov 16  }
  0x1f   : > { %579 = sst [smem:[#allocation9 + $0x2]] (%p786_p5), %s725_s17  ;;  %s726_s24 = smov 128  }
  0x20   : > { %580 = sst [smem:[#allocation9 + $0x3]] (%p786_p5), %s726_s24  ;;  %s727_s26 = smov 8  }
  0x21   : > { %581 = sst [smem:[#allocation9 + $0x4]] (%p786_p5), %s726_s24  ;;  %s120_s29 = scalar_lea.sflag [#allocation3], %s119_s27 }
  0x22   : > { %s510_s25 = sshll.u32 %s134_s8, 26  ;;  %582 = sst [smem:[#allocation9 + $0x5]] (%p786_p5), %s727_s26 }
  0x23   : > { %s511_s28 = sadd.s32 134217728, %s510_s25  ;;  %s728_s30 = smov 131072  }
  0x24   : > { %583 = dma.general (%p786_p5), %s129_s4, 8192, %s143_s7, %s120_s29, %s728_s30, [#allocation9], %s511_s28, 0  }
  0x25 PF: > { %167 = sbr.rel (%p807_p13) target bundleno = 104 (0x68), region = 28 }
  0x2a   : > { %695 = dma.done.wait (%p61_p4), [#allocation5], 16  }
  0x2b   : > { %697 = vsyncadd (%p61_p4), [#allocation5], 4294967280  ;;  %s849_s3 = sand.u32 1, %s712_s10  }
  0x2c   : > { %s514_s27 = sshll.u32 %s849_s3, 9  ;;  %s174_s5 = scalar_lea.sflag [#allocation3], %s849_s3 }
  0x2d   : > { %s853_s19 = scalar_lea.vmem [#allocation6], %s514_s27 }
  0x2e   : > { %699 = dma.done.wait (%p792_p6), %s174_s5, 8192  }
  0x2f   : > { %701 = vsyncadd (%p792_p6), %s174_s5, 4294959104 }
  0x30   : > { %182 = sfence }
  0x31   : > { %s217_s23 = sld [smem:[#allocation2]]  ;;  %v201_v0 = vld [vmem:[%s853_s19] sm:$0xff]  ;;  %v202_v1 = vld [vmem:[%s853_s19 + $0x8] sm:$0xff]  ;;  %v203_v2 = vld [vmem:[%s853_s19 + $0x10] sm:$0xff]  ;;  %s515_s20 = sshll.u32 %s849_s3, 7 }
  0x32   : > { %s532_s4 = sld [smem:[#allocation2 + $0x1]]  ;;  %v516_v3 = vld [vmem:[%s853_s19 + $0x80] sm:$0xff]  ;;  %v517_v4 = vld [vmem:[%s853_s19 + $0x88] sm:$0xff]  ;;  %v518_v5 = vld [vmem:[%s853_s19 + $0x90] sm:$0xff]  ;;  %s921_s8 = scalar_lea.vmem [#allocation7], %s515_s20 }
  0x33   : > { %s549_s6 = sld [smem:[#allocation2 + $0x2]]  ;;  %v533_v7 = vld [vmem:[%s853_s19 + $0x100] sm:$0xff]  ;;  %v534_v8 = vld [vmem:[%s853_s19 + $0x108] sm:$0xff]  ;;  %v535_v9 = vld [vmem:[%s853_s19 + $0x110] sm:$0xff]  ;;  %s573_s14 = sshll.u32 %s768_s13, 11 }
  0x34   : > { %s566_s7 = sld [smem:[#allocation2 + $0x3]]  ;;  %v550_v12 = vld [vmem:[%s853_s19 + $0x180] sm:$0xff]  ;;  %v551_v14 = vld [vmem:[%s853_s19 + $0x188] sm:$0xff]  ;;  %v552_v20 = vld [vmem:[%s853_s19 + $0x190] sm:$0xff]  ;;  %s418_s16 = sshll.u32 %s921_s8, 4  ;;  %s1021_s16 = int_to_ptr.vmem [resolvable:$true] %s418_s16 }
  0x35   : > { %v204_v21 = vld [vmem:[%s853_s19 + $0x18] sm:$0xff]  ;;  %v205_v33 = vld [vmem:[%s853_s19 + $0x20] sm:$0xff]  ;;  %v206_v45 = vld [vmem:[%s853_s19 + $0x28] sm:$0xff]  ;;  %s1019_s25 = scalar_lea.hbm %s1068_s2, %s573_s14  ;;  %s405_s13 = scalar_lea.sflag [#allocation4], %s849_s3 }
  0x36   : > { %v519_v22 = vld [vmem:[%s853_s19 + $0x98] sm:$0xff]  ;;  %v520_v34 = vld [vmem:[%s853_s19 + $0xa0] sm:$0xff]  ;;  %v521_v46 = vld [vmem:[%s853_s19 + $0xa8] sm:$0xff]  ;;  %s652_s26 = scalar_lea.vmem %s1021_s16, 2048  ;;  %s729_s28 = smov [#allocation7]  }
  0x37   : > { %v865_v6 = vstv %s217_s23  ;;  %v536_v27 = vld [vmem:[%s853_s19 + $0x118] sm:$0xff]  ;;  %v537_v39 = vld [vmem:[%s853_s19 + $0x120] sm:$0xff]  ;;  %v538_v51 = vld [vmem:[%s853_s19 + $0x128] sm:$0xff]  ;;  %p653_p3 = scmp.ne.s32.totalorder %s1021_s16, %s652_s26  ;;  %s656_s29 = sshll.u32 %s729_s28, 4  ;;  %s657_s29 = int_to_ptr.vmem [resolvable:$false] %s656_s29 }
  0x38   : > { %v219_v10 = vmul.f32 %v865_v6, %v201_v0  ;;  %v871_v11 = vstv %s532_s4  ;;  %v220_v13 = vmul.f32 %v865_v6, %v202_v1  ;;  %v221_v15 = vmul.f32 %v865_v6, %v203_v2  ;;  %v553_v28 = vld [vmem:[%s853_s19 + $0x198] sm:$0xff]  ;;  %v554_v40 = vld [vmem:[%s853_s19 + $0x1a0] sm:$0xff]  ;;  %v555_v52 = vld [vmem:[%s853_s19 + $0x1a8] sm:$0xff]  ;;  %s658_s30 = scalar_lea.vmem %s657_s29, 4096  ;;  %p659_p6 = scmp.lt.s32.totalorder %s1021_s16, %s657_s29 }
  0x39   : > { %v254_v16 = vmul.f32 %v516_v3, %v871_v11  ;;  %v878_v17 = vstv %s549_s6  ;;  %v255_v18 = vmul.f32 %v517_v4, %v871_v11  ;;  %v256_v19 = vmul.f32 %v518_v5, %v871_v11  ;;  %v207_v53 = vld [vmem:[%s853_s19 + $0x30] sm:$0xff]  ;;  %v208_v1 = vld [vmem:[%s853_s19 + $0x38] sm:$0xff]  ;;  %p654_p4 = pnand %p653_p3, %p799_p11  ;;  %p660_p7 = scmp.lt.s32.totalorder %s658_s30, %s652_s26 }
  0x3a   : > { %v305_v23 = vmul.f32 %v533_v7, %v878_v17  ;;  %v886_v24 = vstv %s566_s7  ;;  %v306_v25 = vmul.f32 %v534_v8, %v878_v17  ;;  %v307_v26 = vmul.f32 %v535_v9, %v878_v17  ;;  %v522_v58 = vld [vmem:[%s853_s19 + $0xb0] sm:$0xff]  ;;  %v523_v2 = vld [vmem:[%s853_s19 + $0xb8] sm:$0xff] }
  0x3b   : > { %v270_v29 = vadd.f32 %v254_v16, %v219_v10  ;;  %v356_v30 = vmul.f32 %v550_v12, %v886_v24  ;;  %v271_v31 = vadd.f32 %v255_v18, %v220_v13  ;;  %v357_v32 = vmul.f32 %v551_v14, %v886_v24  ;;  %v539_v59 = vld [vmem:[%s853_s19 + $0x130] sm:$0xff]  ;;  %v540_v8 = vld [vmem:[%s853_s19 + $0x138] sm:$0xff]  ;;  %v524_v16 = vld [vmem:[%s853_s19 + $0xc0] sm:$0xff]  ;;  %p655_p5 = pneg %p654_p4  ;;  %p661_p8 = por %p660_p7, %p659_p6 }
  0x3c   : > { %v272_v35 = vadd.f32 %v256_v19, %v221_v15  ;;  %v358_v36 = vmul.f32 %v552_v20, %v886_v24  ;;  %v222_v37 = vmul.f32 %v865_v6, %v204_v21  ;;  %v257_v38 = vmul.f32 %v519_v22, %v871_v11  ;;  %v556_v0 = vld [vmem:[%s853_s19 + $0x1b0] sm:$0xff]  ;;  %v557_v9 = vld [vmem:[%s853_s19 + $0x1b8] sm:$0xff]  ;;  %v209_v15 = vld [vmem:[%s853_s19 + $0x40] sm:$0xff] }
  0x3d   : > { %v321_v41 = vadd.f32 %v305_v23, %v270_v29  ;;  %v322_v42 = vadd.f32 %v306_v25, %v271_v31  ;;  %v308_v43 = vmul.f32 %v536_v27, %v878_v17  ;;  %v359_v44 = vmul.f32 %v553_v28, %v886_v24  ;;  %v541_v22 = vld [vmem:[%s853_s19 + $0x140] sm:$0xff]  ;;  %v210_v25 = vld [vmem:[%s853_s19 + $0x48] sm:$0xff]  ;;  %p662_p9 = pnand %p661_p8, %p655_p5 }
  0x3e   : > { %v323_v47 = vadd.f32 %v307_v26, %v272_v35  ;;  %v273_v48 = vadd.f32 %v257_v38, %v222_v37  ;;  %v223_v49 = vmul.f32 %v865_v6, %v205_v33  ;;  %v258_v50 = vmul.f32 %v520_v34, %v871_v11  ;;  %v558_v23 = vld [vmem:[%s853_s19 + $0x1c0] sm:$0xff]  ;;  %v542_v35 = vld [vmem:[%s853_s19 + $0x148] sm:$0xff]  ;;  %v211_v37 = vld [vmem:[%s853_s19 + $0x50] sm:$0xff] }
  0x3f   : > { %v372_v54 = vadd.f32 %v356_v30, %v321_v41  ;;  %v373_v55 = vadd.f32 %v357_v32, %v322_v42  ;;  %v309_v56 = vmul.f32 %v537_v39, %v878_v17  ;;  %v360_v57 = vmul.f32 %v554_v40, %v886_v24  ;;  %v525_v30 = vld [vmem:[%s853_s19 + $0xc8] sm:$0xff]  ;;  %v526_v42 = vld [vmem:[%s853_s19 + $0xd0] sm:$0xff] }
  0x40   : > { %v374_v60 = vadd.f32 %v358_v36, %v323_v47  ;;  %v324_v61 = vadd.f32 %v308_v43, %v273_v48  ;;  %v274_v62 = vadd.f32 %v258_v50, %v223_v49  ;;  %v224_v63 = vmul.f32 %v865_v6, %v206_v45  ;;  %v559_v36 = vld [vmem:[%s853_s19 + $0x1c8] sm:$0xff]  ;;  %v543_v43 = vld [vmem:[%s853_s19 + $0x150] sm:$0xff]  ;;  %v212_v49 = vld [vmem:[%s853_s19 + $0x58] sm:$0xff] }
  0x41   : > { %388 = vst [vmem:[%s921_s8] sm:$0xff] %v372_v54  ;;  %389 = vst [vmem:[%s921_s8 + $0x8] sm:$0xff] %v373_v55  ;;  %v259_v3 = vmul.f32 %v521_v46, %v871_v11  ;;  %v310_v4 = vmul.f32 %v538_v51, %v878_v17  ;;  %v361_v5 = vmul.f32 %v555_v52, %v886_v24  ;;  %v560_v48 = vld [vmem:[%s853_s19 + $0x1d0] sm:$0xff]  ;;  %v527_v50 = vld [vmem:[%s853_s19 + $0xd8] sm:$0xff] }
  0x42   : > { %v225_v7 = vmul.f32 %v865_v6, %v207_v53  ;;  %390 = vst [vmem:[%s921_s8 + $0x10] sm:$0xff] %v374_v60  ;;  %v375_v10 = vadd.f32 %v359_v44, %v324_v61  ;;  %v325_v12 = vadd.f32 %v309_v56, %v274_v62  ;;  %v260_v13 = vmul.f32 %v522_v58, %v871_v11  ;;  %v544_v55 = vld [vmem:[%s853_s19 + $0x158] sm:$0xff]  ;;  %v213_v61 = vld [vmem:[%s853_s19 + $0x60] sm:$0xff] }
  0x43   : > { %v311_v14 = vmul.f32 %v539_v59, %v878_v17  ;;  %v275_v18 = vadd.f32 %v259_v3, %v224_v63  ;;  %v362_v19 = vmul.f32 %v556_v0, %v886_v24  ;;  %v226_v20 = vmul.f32 %v865_v6, %v208_v1  ;;  %v561_v60 = vld [vmem:[%s853_s19 + $0x1d8] sm:$0xff]  ;;  %v528_v62 = vld [vmem:[%s853_s19 + $0xe0] sm:$0xff] }
  0x44   : > { %v261_v21 = vmul.f32 %v523_v2, %v871_v11  ;;  %391 = vst [vmem:[%s921_s8 + $0x18] sm:$0xff] %v375_v10  ;;  %v376_v26 = vadd.f32 %v360_v57, %v325_v12  ;;  %v276_v27 = vadd.f32 %v260_v13, %v225_v7  ;;  %v312_v28 = vmul.f32 %v540_v8, %v878_v17  ;;  %v545_v3 = vld [vmem:[%s853_s19 + $0x160] sm:$0xff]  ;;  %v214_v10 = vld [vmem:[%s853_s19 + $0x68] sm:$0xff] }
  0x45   : > { %v363_v29 = vmul.f32 %v557_v9, %v886_v24  ;;  %v326_v31 = vadd.f32 %v310_v4, %v275_v18  ;;  %v227_v33 = vmul.f32 %v865_v6, %v209_v15  ;;  %v262_v34 = vmul.f32 %v524_v16, %v871_v11  ;;  %v562_v4 = vld [vmem:[%s853_s19 + $0x1e0] sm:$0xff]  ;;  %v529_v12 = vld [vmem:[%s853_s19 + $0xe8] sm:$0xff] }
  0x46   : > { %v277_v32 = vadd.f32 %v261_v21, %v226_v20  ;;  %392 = vst [vmem:[%s921_s8 + $0x20] sm:$0xff] %v376_v26  ;;  %v327_v38 = vadd.f32 %v311_v14, %v276_v27  ;;  %v313_v39 = vmul.f32 %v541_v22, %v878_v17  ;;  %v364_v40 = vmul.f32 %v558_v23, %v886_v24  ;;  %v546_v18 = vld [vmem:[%s853_s19 + $0x168] sm:$0xff]  ;;  %v215_v20 = vld [vmem:[%s853_s19 + $0x70] sm:$0xff] }
  0x47   : > { %v228_v41 = vmul.f32 %v865_v6, %v210_v25  ;;  %v377_v44 = vadd.f32 %v361_v5, %v326_v31  ;;  %v278_v46 = vadd.f32 %v262_v34, %v227_v33  ;;  %v263_v47 = vmul.f32 %v525_v30, %v871_v11  ;;  %v530_v26 = vld [vmem:[%s853_s19 + $0xf0] sm:$0xff]  ;;  %v216_v33 = vld [vmem:[%s853_s19 + $0x78] sm:$0xff] }
  0x48   : > { %v328_v45 = vadd.f32 %v312_v28, %v277_v32  ;;  %v378_v51 = vadd.f32 %v362_v19, %v327_v38  ;;  %v314_v52 = vmul.f32 %v542_v35, %v878_v17  ;;  %v365_v53 = vmul.f32 %v559_v36, %v886_v24  ;;  %v563_v19 = vld [vmem:[%s853_s19 + $0x1e8] sm:$0xff]  ;;  %v547_v27 = vld [vmem:[%s853_s19 + $0x170] sm:$0xff]  ;;  %v531_v34 = vld [vmem:[%s853_s19 + $0xf8] sm:$0xff] }
  0x49   : > { %v229_v54 = vmul.f32 %v865_v6, %v211_v37  ;;  %393 = vst [vmem:[%s921_s8 + $0x28] sm:$0xff] %v377_v44  ;;  %v329_v57 = vadd.f32 %v313_v39, %v278_v46  ;;  %v279_v58 = vadd.f32 %v263_v47, %v228_v41  ;;  %v264_v59 = vmul.f32 %v526_v42, %v871_v11  ;;  %v564_v32 = vld [vmem:[%s853_s19 + $0x1f0] sm:$0xff]  ;;  %v548_v39 = vld [vmem:[%s853_s19 + $0x178] sm:$0xff] }
  0x4a   : > { %v379_v56 = vadd.f32 %v363_v29, %v328_v45  ;;  %394 = vst [vmem:[%s921_s8 + $0x30] sm:$0xff] %v378_v51  ;;  %v315_v63 = vmul.f32 %v543_v43, %v878_v17  ;;  %v366_v0 = vmul.f32 %v560_v48, %v886_v24  ;;  %v230_v1 = vmul.f32 %v865_v6, %v212_v49  ;;  %v565_v44 = vld [vmem:[%s853_s19 + $0x1f8] sm:$0xff] }
  0x4b   : > { %v265_v2 = vmul.f32 %v527_v50, %v871_v11  ;;  %v380_v5 = vadd.f32 %v364_v40, %v329_v57  ;;  %v330_v7 = vadd.f32 %v314_v52, %v279_v58  ;;  %v280_v8 = vadd.f32 %v264_v59, %v229_v54 }
  0x4c   : > { %395 = vst [vmem:[%s921_s8 + $0x38] sm:$0xff] %v379_v56  ;;  %v316_v9 = vmul.f32 %v544_v55, %v878_v17  ;;  %v367_v14 = vmul.f32 %v561_v60, %v886_v24  ;;  %v231_v15 = vmul.f32 %v865_v6, %v213_v61  ;;  %v266_v16 = vmul.f32 %v528_v62, %v871_v11 }
  0x4d   : > { %v281_v13 = vadd.f32 %v265_v2, %v230_v1  ;;  %396 = vst [vmem:[%s921_s8 + $0x40] sm:$0xff] %v380_v5  ;;  %v381_v21 = vadd.f32 %v365_v53, %v330_v7  ;;  %v331_v22 = vadd.f32 %v315_v63, %v280_v8  ;;  %v317_v23 = vmul.f32 %v545_v3, %v878_v17 }
  0x4e   : > { %v368_v25 = vmul.f32 %v562_v4, %v886_v24  ;;  %v282_v29 = vadd.f32 %v266_v16, %v231_v15  ;;  %v232_v30 = vmul.f32 %v865_v6, %v214_v10  ;;  %v267_v31 = vmul.f32 %v529_v12, %v871_v11 }
  0x4f   : > { %v332_v28 = vadd.f32 %v316_v9, %v281_v13  ;;  %397 = vst [vmem:[%s921_s8 + $0x48] sm:$0xff] %v381_v21  ;;  %v382_v35 = vadd.f32 %v366_v0, %v331_v22  ;;  %v318_v36 = vmul.f32 %v546_v18, %v878_v17  ;;  %v369_v37 = vmul.f32 %v563_v19, %v886_v24 }
  0x50   : > { %v233_v38 = vmul.f32 %v865_v6, %v215_v20  ;;  %v333_v41 = vadd.f32 %v317_v23, %v282_v29  ;;  %v283_v42 = vadd.f32 %v267_v31, %v232_v30  ;;  %v268_v43 = vmul.f32 %v530_v26, %v871_v11 }
  0x51   : > { %v383_v40 = vadd.f32 %v367_v14, %v332_v28  ;;  %398 = vst [vmem:[%s921_s8 + $0x50] sm:$0xff] %v382_v35  ;;  %v319_v45 = vmul.f32 %v547_v27, %v878_v17  ;;  %v370_v46 = vmul.f32 %v564_v32, %v886_v24  ;;  %v234_v47 = vmul.f32 %v865_v6, %v216_v33 }
  0x52   : > { %v269_v48 = vmul.f32 %v531_v34, %v871_v11  ;;  %v384_v49 = vadd.f32 %v368_v25, %v333_v41  ;;  %v334_v50 = vadd.f32 %v318_v36, %v283_v42  ;;  %v284_v51 = vadd.f32 %v268_v43, %v233_v38 }
  0x53   : > { %399 = vst [vmem:[%s921_s8 + $0x58] sm:$0xff] %v383_v40  ;;  %v320_v52 = vmul.f32 %v548_v39, %v878_v17  ;;  %v371_v54 = vmul.f32 %v565_v44, %v886_v24 }
  0x54   : > { %v285_v53 = vadd.f32 %v269_v48, %v234_v47  ;;  %400 = vst [vmem:[%s921_s8 + $0x60] sm:$0xff] %v384_v49  ;;  %v385_v55 = vadd.f32 %v369_v37, %v334_v50  ;;  %v335_v6 = vadd.f32 %v319_v45, %v284_v51 }
  0x56   : > { %v336_v56 = vadd.f32 %v320_v52, %v285_v53  ;;  %401 = vst [vmem:[%s921_s8 + $0x68] sm:$0xff] %v385_v55  ;;  %v386_v11 = vadd.f32 %v370_v46, %v335_v6 }
  0x58   : > { %v387_v17 = vadd.f32 %v371_v54, %v336_v56  ;;  %402 = vst [vmem:[%s921_s8 + $0x70] sm:$0xff] %v386_v11 }
  0x5a   : > { %403 = vst [vmem:[%s921_s8 + $0x78] sm:$0xff] %v387_v17 }
  0x5b   : > { %665 = shalt.err (!%p662_p9)
}
  0x5c   : > { %s666_s27 = scalar_lea.hbm %s1019_s25, 2048  ;;  %s670_s23 = scalar_lea.hbm %s1068_s2, 4096 }
  0x5d   : > { %p667_p10 = scmp.ne.s32.totalorder %s1019_s25, %s666_s27  ;;  %p671_p2 = scmp.lt.s32.totalorder %s1019_s25, %s1068_s2 }
  0x5e   : > { %p672_p3 = scmp.lt.s32.totalorder %s670_s23, %s666_s27 }
  0x5f   : > { %p668_p13 = pnand %p667_p10, %p799_p11 }
  0x60   : > { %p673_p4 = por %p672_p3, %p671_p2 }
  0x61   : > { %p669_p1 = pneg %p668_p13 }
  0x63   : > { %p674_p5 = pnand %p673_p4, %p669_p1 }
  0x65   : > { %677 = shalt.err (!%p674_p5)
}
  0x66   : > { %s730_s7 = smov 128   ;;  %s731_s20 = smov 8  }
  0x67   : > { %587 = dma.vmem_to_hbm [thread:$0]  (%p799_p11), %s1021_s16, 2048, %s1019_s25, %s405_s13, %s730_s7, %s730_s7, %s731_s20  }
  0x68 PF: > { %s433_s8 = sand.u32 1, %s708_s9   ;;  %p594_p6 = pnand %p506_p0, %p803_p12 }
  0x69   : > { %s434_s14 = scalar_lea.sflag [#allocation4], %s433_s8 }
  0x6a   : > { %p595_p7 = pneg %p594_p6 }
  0x6c   : > { %703 = dma.done.wait (%p595_p7), %s434_s14, 2048  }
  0x6d   : > { %705 = vsyncadd (%p595_p7), %s434_s14, 4294965248  ;;  %p16_p8 = scmp.ge.s32.totalorder %s772_s15, 4   ;;  %s1074_s9 = smov %s712_s10 }
  0x6e   : > { %s1075_s10 = smov %s716_s11  ;;  %s1076_s11 = smov %s784_s18 }
  0x6f   : > { %s1077_s12 = smov %s772_s15  ;;  %18 = sbr.rel (!%p16_p8) target bundleno = 6 (0x6), region = 86 }
  0x74   :  { %439 = vsyncpa [#allocation3], 1 }
  0x75   :  { %441 = vsyncpa [#allocation3 + $0x1], 1 }
  0x76   :  { %442 = vsyncpa [#allocation4], 1 }
  0x77   :  { %444 = vsyncpa [#allocation4 + $0x1], 1 }
  0x78   :  { %445 = vsyncpa [#allocation5], 1 }
  0x79   :  { %447 = vsyncpa [#allocation5 + $0x1], 1 }

</bundles_post_ra>
